<compile_context>
chip_gen: v7x
topology: tpu7x:2x2x1
jax: 0.10.0
libtpu: 0.0.40
codegen_flags: <defaults>
</compile_context>

<pallas_src>
import functools

import jax
import jax.numpy as jnp
from jax.experimental import pallas as pl
from jax.experimental.pallas import tpu as pltpu


def _round_up(x, m):
    return ((x + m - 1) // m) * m


def _ar_matmul_kernel(x_ref, w_ref, b_ref, o_ref, acc_ref):
    """Computes one (tm, tn) output tile; K is the innermost reduction axis."""
    k = pl.program_id(2)

    @pl.when(k == 0)
    def _init():
        # Fold the bias into the accumulator init: saves a full VPU epilogue
        # pass and avoids re-broadcasting the bias on every K step.
        acc_ref[...] = jnp.broadcast_to(
            b_ref[...].astype(jnp.float32), acc_ref.shape)

    acc_ref[...] += jnp.dot(
        x_ref[...],                            # bf16 tile -> MXU fast path
        w_ref[...],
        preferred_element_type=jnp.float32)    # f32 accumulation

    @pl.when(k == pl.num_programs(2) - 1)
    def _store():
        o_ref[...] = acc_ref[...].astype(o_ref.dtype)


def _pick_tiles(M, K, N):
    tm = min(256, _round_up(M, 8))     # sublane-aligned rows
    tk = min(512, _round_up(K, 128))   # lane-aligned contraction
    tn = min(512, _round_up(N, 128))   # lane-dense output columns
    return tm, tk, tn


@functools.partial(jax.jit, static_argnames=("pred_len", "compute_dtype"))
def ar_forward(batch_x, weight_t, bias, pred_len, compute_dtype=jnp.bfloat16):
    """batch_x: (B, L, D); weight_t: (L*D, P*D) (= W.T); bias: (P*D,)."""
    B, L, D = batch_x.shape
    K = L * D
    N = pred_len * D
    assert weight_t.shape == (K, N) and bias.shape == (N,)

    tm, tk, tn = _pick_tiles(B, K, N)
    Mp, Kp, Np = _round_up(B, tm), _round_up(K, tk), _round_up(N, tn)

    x2d = batch_x.reshape(B, K)
    x_p = jnp.pad(x2d, ((0, Mp - B), (0, Kp - K))).astype(compute_dtype)
    w_p = jnp.pad(weight_t, ((0, Kp - K), (0, Np - N))).astype(compute_dtype)
    b_p = jnp.pad(bias, (0, Np - N)).reshape(1, Np).astype(jnp.float32)

    grid = (Mp // tm, Np // tn, Kp // tk)

    out_p = pl.pallas_call(
        _ar_matmul_kernel,
        out_shape=jax.ShapeDtypeStruct((Mp, Np), batch_x.dtype),
        grid_spec=pltpu.PrefetchScalarGridSpec(
            num_scalar_prefetch=0,
            grid=grid,
            in_specs=[
                pl.BlockSpec((tm, tk), lambda i, j, k: (i, k)),
                pl.BlockSpec((tk, tn), lambda i, j, k: (k, j)),
                pl.BlockSpec((1, tn), lambda i, j, k: (0, j)),
            ],
            out_specs=pl.BlockSpec((tm, tn), lambda i, j, k: (i, j)),
            scratch_shapes=[pltpu.VMEM((tm, tn), jnp.float32)],
        ),
        compiler_params=pltpu.CompilerParams(
            dimension_semantics=("parallel", "parallel", "arbitrary"),
            vmem_limit_bytes=32 * 1024 * 1024,
        ),
        cost_estimate=pl.CostEstimate(
            flops=2 * Mp * Kp * Np,
            transcendentals=0,
            bytes_accessed=(x_p.size * x_p.dtype.itemsize
                            + w_p.size * w_p.dtype.itemsize
                            + b_p.size * b_p.dtype.itemsize
                            + Mp * Np * batch_x.dtype.itemsize),
        ),
    )(x_p, w_p, b_p)

    return out_p[:B, :N].reshape(B, pred_len, D)


def init_ar_params(key, input_dim, seq_len, pred_len, dtype=jnp.float32):
    """Deterministic init mimicking nn.Linear (uniform fan-in init)."""
    in_f = seq_len * input_dim
    out_f = pred_len * input_dim
    k_w, k_b = jax.random.split(key)
    bound = 1.0 / float(in_f) ** 0.5
    # PyTorch stores W as (out_f, in_f); keep that convention, transpose for kernel.
    weight = jax.random.uniform(k_w, (out_f, in_f), dtype, -bound, bound)
    bias = jax.random.uniform(k_b, (out_f,), dtype, -bound, bound)
    return weight, bias


if __name__ == "__main__":
    key = jax.random.PRNGKey(0)
    k_params, k_x = jax.random.split(key)

    # Small shapes consistent with the module's forward.
    B, seq_len, input_dim, pred_len = 2, 8, 4, 8
    label_len = 4  # unused by the forward math (kept for signature parity)

    weight, bias = init_ar_params(k_params, input_dim, seq_len, pred_len)
    weight_t = weight.T  # (in_features, out_features) so the kernel does x @ W

    batch_x = jax.random.normal(k_x, (B, seq_len, input_dim), jnp.float32)

    out = ar_forward(batch_x, weight_t, bias, pred_len=pred_len)
    out = jax.block_until_ready(out)
    assert out.shape == (B, pred_len, input_dim)

    x2d = batch_x.reshape(B, -1)
    # Reference 1: same precision path as the kernel (bf16 MXU inputs, f32 acc).
    ref_bf16 = (jnp.dot(x2d.astype(jnp.bfloat16),
                        weight_t.astype(jnp.bfloat16),
                        preferred_element_type=jnp.float32)
                + bias).reshape(B, pred_len, input_dim)
    assert jnp.allclose(out, ref_bf16, atol=1e-4, rtol=1e-4)

    # Reference 2: full-f32 PyTorch-equivalent math (loose tol due to bf16 compute).
    ref_f32 = (x2d @ weight.T + bias).reshape(B, pred_len, input_dim)
    assert jnp.allclose(out, ref_f32, atol=5e-2, rtol=5e-2)

    print("KERNEL_OK")
</pallas_src>

<mosaic_0001>
module attributes {stable_mosaic.version = 11 : i64} {
  func.func @_ar_matmul_kernel(%arg0: i32, %arg1: i32, %arg2: i32, %arg3: memref<8x128xbf16, #tpu.memory_space<vmem>>, %arg4: memref<128x128xbf16, #tpu.memory_space<vmem>>, %arg5: memref<1x128xf32, #tpu.memory_space<vmem>>, %arg6: memref<8x128xf32, #tpu.memory_space<vmem>>, %arg7: memref<8x128xf32, #tpu.memory_space<vmem>>) attributes {dimension_semantics = [#tpu.dimension_semantics<parallel>, #tpu.dimension_semantics<parallel>, #tpu.dimension_semantics<arbitrary>], iteration_bounds = array<i64: 1, 1, 1>, scalar_prefetch = 0 : i64, scratch_operands = 1 : i64, tpu.core_type = #tpu.core_type<tc>, window_params = [{transform_indices = @transform_0, window_bounds = array<i64: 8, 128>}, {transform_indices = @transform_1, window_bounds = array<i64: 128, 128>}, {transform_indices = @transform_2, window_bounds = array<i64: 1, 128>}, {transform_indices = @transform_3, window_bounds = array<i64: 8, 128>}]} {
    %c0_i32 = arith.constant 0 : i32
    %0 = arith.cmpi eq, %arg2, %c0_i32 : i32
    %1 = arith.extui %0 : i1 to i32
    %c0_i32_0 = arith.constant 0 : i32
    %2 = arith.cmpi ne, %1, %c0_i32_0 : i32
    scf.if %2 {
      %c0_10 = arith.constant 0 : index
      %c0_11 = arith.constant 0 : index
      %12 = vector.load %arg5[%c0_10, %c0_11] : memref<1x128xf32, #tpu.memory_space<vmem>>, vector<1x128xf32>
      %13 = vector.shape_cast %12 : vector<1x128xf32> to vector<1x128xf32>
      %14 = vector.broadcast %13 : vector<1x128xf32> to vector<8x128xf32>
      %c0_12 = arith.constant 0 : index
      %c0_13 = arith.constant 0 : index
      %15 = vector.load %arg7[%c0_12, %c0_13] : memref<8x128xf32, #tpu.memory_space<vmem>>, vector<8x128xf32>
      tpu.vector_store %arg7[%c0_12, %c0_13], %14 {strides = array<i32>} : memref<8x128xf32, #tpu.memory_space<vmem>>, vector<8x128xf32>,
    } else {
    }
    %c0 = arith.constant 0 : index
    %c0_1 = arith.constant 0 : index
    %3 = vector.load %arg7[%c0, %c0_1] : memref<8x128xf32, #tpu.memory_space<vmem>>, vector<8x128xf32>
    %c0_2 = arith.constant 0 : index
    %c0_3 = arith.constant 0 : index
    %4 = vector.load %arg3[%c0_2, %c0_3] : memref<8x128xbf16, #tpu.memory_space<vmem>>, vector<8x128xbf16>
    %c0_4 = arith.constant 0 : index
    %c0_5 = arith.constant 0 : index
    %5 = vector.load %arg4[%c0_4, %c0_5] : memref<128x128xbf16, #tpu.memory_space<vmem>>, vector<128x128xbf16>
    %cst = arith.constant dense<0.000000e+00> : vector<8x128xf32>
    %6 = tpu.matmul %4, %5, %cst {dimension_numbers = #tpu.dot_dimension_numbers<[1], [0], [0], [1], [0, 0, 1, 1], [], []>} : vector<8x128xbf16>, vector<128x128xbf16>, vector<8x128xf32> -> vector<8x128xf32>
    %7 = arith.addf %3, %6 : vector<8x128xf32>
    %c0_6 = arith.constant 0 : index
    %c0_7 = arith.constant 0 : index
    %8 = vector.load %arg7[%c0_6, %c0_7] : memref<8x128xf32, #tpu.memory_space<vmem>>, vector<8x128xf32>
    tpu.vector_store %arg7[%c0_6, %c0_7], %7 {strides = array<i32>} : memref<8x128xf32, #tpu.memory_space<vmem>>, vector<8x128xf32>,
    %c0_i32_8 = arith.constant 0 : i32
    %9 = arith.cmpi eq, %arg2, %c0_i32_8 : i32
    %10 = arith.extui %9 : i1 to i32
    %c0_i32_9 = arith.constant 0 : i32
    %11 = arith.cmpi ne, %10, %c0_i32_9 : i32
    scf.if %11 {
      %c0_10 = arith.constant 0 : index
      %c0_11 = arith.constant 0 : index
      %12 = vector.load %arg7[%c0_10, %c0_11] : memref<8x128xf32, #tpu.memory_space<vmem>>, vector<8x128xf32>
      %c0_12 = arith.constant 0 : index
      %c0_13 = arith.constant 0 : index
      %13 = vector.load %arg6[%c0_12, %c0_13] : memref<8x128xf32, #tpu.memory_space<vmem>>, vector<8x128xf32>
      tpu.vector_store %arg6[%c0_12, %c0_13], %12 {strides = array<i32>} : memref<8x128xf32, #tpu.memory_space<vmem>>, vector<8x128xf32>,
    } else {
    }
    return
  }
  func.func @transform_0(%arg0: i32, %arg1: i32, %arg2: i32) -> (i32, i32) {
    %c0_i32 = arith.constant 0 : i32
    return %arg0, %arg2 : i32, i32
  }
  func.func @transform_1(%arg0: i32, %arg1: i32, %arg2: i32) -> (i32, i32) {
    %c0_i32 = arith.constant 0 : i32
    return %arg2, %arg1 : i32, i32
  }
  func.func @transform_2(%arg0: i32, %arg1: i32, %arg2: i32) -> (i32, i32) {
    %c0_i32 = arith.constant 0 : i32
    %c0_i32_0 = arith.constant 0 : i32
    return %c0_i32, %arg1 : i32, i32
  }
  func.func @transform_3(%arg0: i32, %arg1: i32, %arg2: i32) -> (i32, i32) {
    %c0_i32 = arith.constant 0 : i32
    return %arg0, %arg1 : i32, i32
  }
}

</mosaic_0001>

<bundles_post_ra>
// kernel: ar_forward.1
= control target key start
LH: loop header
LB: loop body
LE: loop exit
PB: predicated region body
PF: predicated region fallthrough
CT: control target
= control target key end

     0   :  { %v192_v0 = vmov 0.0   ;;  %vm193_vm0 = vmmov 0   ;;  %s247_s1 = inlined_call_operand.vmem [shape: bf16[128,128], index: 1, kind: input, shape index: {}]   ;;  %s248_s0 = inlined_call_operand.vmem [shape: bf16[8,128], index: 0, kind: input, shape index: {}]   ;;  %s249_s2 = inlined_call_operand.vmem [shape: f32[1,128], index: 2, kind: input, shape index: {}]   ;;  %s250_s3 = inlined_call_operand.vmem [shape: f32[8,128], index: 3, kind: output, shape index: {}]  }
   0x1   :  { %162 = vmatprep.subr.bf16.mxu0 %v192_v0  ;;  %v184_v1 = vld [vmem:[%s247_s1] sm:$0xff]   ;;  %178 = vmatprep.mubr.msk.bf16.mxu0 %vm193_vm0, %v192_v0  ;;  %v185_v2 = vld [vmem:[%s247_s1 + $0x8] sm:$0xff]   ;;  %v186_v3 = vld [vmem:[%s247_s1 + $0x10] sm:$0xff]  }
   0x2   :  { %163 = vmatpush3.bf16.msra.mxu0 %v184_v1  ;;  %v187_v4 = vld [vmem:[%s247_s1 + $0x18] sm:$0xff]   ;;  %v188_v5 = vld [vmem:[%s247_s1 + $0x20] sm:$0xff]   ;;  %v189_v6 = vld [vmem:[%s247_s1 + $0x28] sm:$0xff]  }
   0x3   :  { %164 = vmatprep.subr.bf16.mxu0 %v192_v0  ;;  %v190_v7 = vld [vmem:[%s247_s1 + $0x30] sm:$0xff]   ;;  %v191_v8 = vld [vmem:[%s247_s1 + $0x38] sm:$0xff]   ;;  %v28_v9 = vld [vmem:[%s248_s0] sm:$0xf] }
   0x4   :  { %v144_v10 = vld [vmem:[%s249_s2] ss:$0 sm:$0xff] }
   0x6   :  { %165 = vmatpush3.bf16.msra.mxu0 %v185_v2 }
   0x7   :  { %166 = vmatprep.subr.bf16.mxu0 %v192_v0 }
   0xa   :  { %167 = vmatpush3.bf16.msra.mxu0 %v186_v3 }
   0xb   :  { %168 = vmatprep.subr.bf16.mxu0 %v192_v0 }
   0xe   :  { %169 = vmatpush3.bf16.msra.mxu0 %v187_v4 }
   0xf   :  { %170 = vmatprep.subr.bf16.mxu0 %v192_v0 }
  0x12   :  { %171 = vmatpush3.bf16.msra.mxu0 %v188_v5 }
  0x13   :  { %172 = vmatprep.subr.bf16.mxu0 %v192_v0 }
  0x16   :  { %173 = vmatpush3.bf16.msra.mxu0 %v189_v6 }
  0x17   :  { %174 = vmatprep.subr.bf16.mxu0 %v192_v0 }
  0x1a   :  { %175 = vmatpush3.bf16.msra.mxu0 %v190_v7 }
  0x1b   :  { %176 = vmatprep.subr.bf16.mxu0 %v192_v0 }
  0x1e   :  { %177 = vmatpush3.bf16.msra.mxu0 %v191_v8 }
  0x21   :  { %179 = vmatmul.mubr.bf16.vlgmr.msra.gmra.mrb[0].mxu0 %v28_v9 }
  0xf4   :  { %v127_v11 = vpop.f32.mrb[0].mxu0 }
  0xf5   :  { %v133_v12 = vadd.f32 %v144_v10, %v127_v11  ;;  %v180_v13 = vpop.f32.mrb[1].mxu0 }
  0xf6   :  { %v130_v14 = vpop.f32.mrb[2].mxu0 }
  0xf7   :  { %139 = vst [vmem:[%s250_s3] sm:$0xff] %v133_v12  ;;  %v181_v15 = vpop.f32.mrb[3].mxu0 }

</bundles_post_ra>
